<compile_context>
chip_gen: v7x
topology: tpu7x:2x2x1
jax: 0.10.0
libtpu: 0.0.40
codegen_flags: <defaults>
</compile_context>

<pallas_src>
import functools

import jax
import jax.numpy as jnp
from jax.experimental import pallas as pl
from jax.experimental.pallas import tpu as pltpu

BN_EPS = 1e-5
_MXU_DTYPE = jnp.bfloat16          # MXU operand dtype (accumulation stays f32)


def _basic_block_kernel(x_ref, w1_ref, w2_ref, bias_ref, out_ref,
                        xpad_ref, midpad_ref, *,
                        Bn, H, W, Cin, Cout, apply_relu):
    """Fused BasicBlock forward for a stack of Bn images (stride=1, pad=1).

    x_ref     : (Bn, H, W*Cin)        bf16 lane-dense channels-last inputs
    w1_ref    : (3, W*Cin,  W*Cout)   bf16 banded conv1 weights (bn1 scale folded)
    w2_ref    : (3, W*Cout, W*Cout)   bf16 banded conv2 weights (bn2 scale folded)
    bias_ref  : (2, W*Cout)           f32; row 0 = bn1 bias, row 1 = bn2 bias
    out_ref   : (Bn, H, W*Cout)       f32
    xpad_ref  : VMEM (Bn*(H+2), W*Cin)  row-stacked images, 1-row zero halos
    midpad_ref: VMEM (Bn*(H+2), W*Cout) idem, conv2 input
    """
    S = H + 2                       # per-image slot (one halo row above/below)
    R = Bn * S - 2                  # conv-output rows produced by each shifted dot
    WC = W * Cout

    # Zero ONLY the halo rows; the data rows are fully overwritten below.
    # Done every grid step (not gated on program_id) so it stays correct when
    # the batch grid is sharded across TensorCores (megacore).
    zx = jnp.zeros((1, W * Cin), xpad_ref.dtype)
    zm = jnp.zeros((1, WC), midpad_ref.dtype)
    for b in range(Bn):
        xpad_ref[b * S:b * S + 1, :] = zx
        xpad_ref[b * S + S - 1:b * S + S, :] = zx
        midpad_ref[b * S:b * S + 1, :] = zm
        midpad_ref[b * S + S - 1:b * S + S, :] = zm

    # Stack the Bn images along rows. Full-width (lane-aligned) stores — the
    # column halo lives inside the banded weights, not the scratch.
    for b in range(Bn):
        xpad_ref[b * S + 1:b * S + 1 + H, :] = x_ref[b].astype(xpad_ref.dtype)

    # ---- conv1 (*bn1 scale) -> + bn1 bias -> relu (stays in VMEM) ------------
    acc = jnp.zeros((R, WC), jnp.float32)
    for dy in range(3):                                     # statically unrolled
        acc += jnp.dot(xpad_ref[dy:dy + R, :].astype(_MXU_DTYPE), w1_ref[dy],
                       preferred_element_type=jnp.float32)
    acc = jnp.maximum(acc + bias_ref[0:1, :], 0.0)

    # Per-image copy so the separator/halo rows of midpad stay zero (the junk
    # rows of `acc` — conv centred on a separator — are skipped).
    for b in range(Bn):
        midpad_ref[b * S + 1:b * S + 1 + H, :] = \
            acc[b * S:b * S + H].astype(midpad_ref.dtype)

    # ---- conv2 (*bn2 scale) -> + bn2 bias -> + identity -> relu --------------
    acc = jnp.zeros((R, WC), jnp.float32)
    for dy in range(3):
        acc += jnp.dot(midpad_ref[dy:dy + R, :].astype(_MXU_DTYPE), w2_ref[dy],
                       preferred_element_type=jnp.float32)
    acc = acc + bias_ref[1:2, :]

    for b in range(Bn):
        y = acc[b * S:b * S + H] + x_ref[b].astype(jnp.float32)  # identity
        if apply_relu:
            y = jnp.maximum(y, 0.0)
        out_ref[b] = y.astype(out_ref.dtype)


def _banded_conv_weights(w_oihw, W, scale=None):
    """(Cout, Cin, 3, 3) -> (3, W*Cin, W*Cout) block-Toeplitz slabs.

    Slab ky satisfies  out[y, x*Cout + o] += xrow[y + ky - 1] @ slab[ky], where
    xrow[r, c*Cin + i] is the UNPADDED channels-last input row (zero for r
    outside [0, H)). Out-of-range column contributions are simply omitted, i.e.
    the kx zero-padding halo is absorbed into the band. Optionally folds the
    per-output-channel BN scale. Built once in the wrapper (pure JAX).
    """
    Cout, Cin, KH, KW = w_oihw.shape
    assert (KH, KW) == (3, 3)
    wt = jnp.transpose(w_oihw, (2, 3, 1, 0)).astype(jnp.float32)   # (ky,kx,Ci,Co)
    if scale is not None:
        wt = wt * scale.astype(jnp.float32)[None, None, None, :]
    B = jnp.zeros((3, W * Cin, W * Cout), jnp.float32)
    for x in range(W):
        for kx in range(3):
            c = x + kx - 1                     # contributing input column
            if 0 <= c < W:                     # drop (don't wrap) out-of-range
                B = B.at[:, c * Cin:(c + 1) * Cin,
                         x * Cout:(x + 1) * Cout].set(wt[:, kx])
    return B


def fold_bn(gamma, beta, mean, var, eps=BN_EPS):
    scale = gamma / jnp.sqrt(var + eps)
    bias = beta - mean * scale
    return scale, bias


def basic_block_forward(x_nchw, params, *, apply_relu=True, batch_block=None):
    """Pallas implementation of BasicBlock.forward (stride=1, no downsample)."""
    N, Cin, H, W = x_nchw.shape
    w1 = params["w1_oihw"]
    w2 = params["w2_oihw"]
    Cout = w1.shape[0]
    assert w1.shape[1] == Cin and w2.shape == (Cout, Cout, 3, 3)
    assert Cin == Cout, "identity residual requires inplanes == planes"
    # Lane-dense when W*C is a multiple of 128; other widths still run correctly
    # (Mosaic falls back to masked stores) but are slower.

    # Images stacked per grid step: grow the matmul M dim (~batch_block*(H+2))
    # toward the 256 MXU rows of v6e/v7x and amortise per-step overhead.
    if batch_block is None:
        batch_block = max(1, min(N, 256 // (H + 2)))
    while N % batch_block:                      # need an exact divisor of N
        batch_block -= 1
    Bn = batch_block
    # TODO(synk): on v7x (2 TensorCores/chip) prefer a grid length that is a
    #             multiple of 2 when N is large; at tiny N we prioritise M.

    s1, b1 = fold_bn(params["bn1_gamma"], params["bn1_beta"],
                     params["bn1_mean"], params["bn1_var"])
    s2, b2 = fold_bn(params["bn2_gamma"], params["bn2_beta"],
                     params["bn2_mean"], params["bn2_var"])

    # BN scales folded into the banded weights (bf16 MXU operands); the two
    # biases are packed into a single (2, W*Cout) f32 operand.
    w1b = _banded_conv_weights(w1, W, scale=s1).astype(_MXU_DTYPE)
    w2b = _banded_conv_weights(w2, W, scale=s2).astype(_MXU_DTYPE)
    bias = jnp.stack([jnp.tile(b1, W), jnp.tile(b2, W)]).astype(jnp.float32)

    # NCHW -> channels-last, lane-dense (N, H, W*C), bf16 MXU operand.
    x = jnp.transpose(x_nchw, (0, 2, 3, 1)).reshape(N, H, W * Cin)
    x = x.astype(_MXU_DTYPE)

    kernel = functools.partial(_basic_block_kernel, Bn=Bn, H=H, W=W, Cin=Cin,
                               Cout=Cout, apply_relu=apply_relu)

    S = H + 2
    out = pl.pallas_call(
        kernel,
        out_shape=jax.ShapeDtypeStruct((N, H, W * Cout), jnp.float32),
        grid=(N // Bn,),
        in_specs=[
            pl.BlockSpec((Bn, H, W * Cin), lambda n: (n, 0, 0)),
            pl.BlockSpec((3, W * Cin, W * Cout), lambda n: (0, 0, 0)),
            pl.BlockSpec((3, W * Cout, W * Cout), lambda n: (0, 0, 0)),
            pl.BlockSpec((2, W * Cout), lambda n: (0, 0)),
        ],
        out_specs=pl.BlockSpec((Bn, H, W * Cout), lambda n: (n, 0, 0)),
        scratch_shapes=[
            pltpu.VMEM((Bn * S, W * Cin), jnp.float32),
            pltpu.VMEM((Bn * S, W * Cout), jnp.float32),
        ],
        compiler_params=pltpu.CompilerParams(
            dimension_semantics=("parallel",),
            vmem_limit_bytes=32 * 1024 * 1024),
    )(x, w1b, w2b, bias)

    return jnp.transpose(out.reshape(N, H, W, Cout), (0, 3, 1, 2))   # -> NCHW


def _ref_forward(x_nchw, w1_oihw, w2_oihw, p):
    """Pure-JAX reference matching the PyTorch forward (eval-mode BN), f32."""
    def conv(x, w):
        return jax.lax.conv_general_dilated(
            x, w, (1, 1), ((1, 1), (1, 1)),
            dimension_numbers=("NCHW", "OIHW", "NCHW"))

    def bn(x, g, b, m, v):
        sh = (1, -1, 1, 1)
        return (x - m.reshape(sh)) / jnp.sqrt(v.reshape(sh) + BN_EPS) \
            * g.reshape(sh) + b.reshape(sh)

    out = jax.nn.relu(bn(conv(x_nchw, w1_oihw),
                         p["bn1_gamma"], p["bn1_beta"],
                         p["bn1_mean"], p["bn1_var"]))
    out = bn(conv(out, w2_oihw),
             p["bn2_gamma"], p["bn2_beta"],
             p["bn2_mean"], p["bn2_var"]) + x_nchw
    return jax.nn.relu(out)


if __name__ == "__main__":
    N, C, H, W = 2, 8, 16, 16          # inplanes == planes == 8; W*C = 128 lanes
    key = jax.random.PRNGKey(0)
    ks = jax.random.split(key, 12)

    x = jax.random.normal(ks[0], (N, C, H, W), jnp.float32)

    w1_oihw = jax.random.normal(ks[1], (C, C, 3, 3), jnp.float32) * 0.1
    w2_oihw = jax.random.normal(ks[2], (C, C, 3, 3), jnp.float32) * 0.1

    params = {
        "w1_oihw": w1_oihw,
        "w2_oihw": w2_oihw,
        "bn1_gamma": jax.random.uniform(ks[3], (C,), jnp.float32, 0.5, 1.5),
        "bn1_beta": jax.random.normal(ks[4], (C,), jnp.float32) * 0.1,
        "bn1_mean": jax.random.normal(ks[5], (C,), jnp.float32) * 0.1,
        "bn1_var": jax.random.uniform(ks[6], (C,), jnp.float32, 0.5, 1.5),
        "bn2_gamma": jax.random.uniform(ks[7], (C,), jnp.float32, 0.5, 1.5),
        "bn2_beta": jax.random.normal(ks[8], (C,), jnp.float32) * 0.1,
        "bn2_mean": jax.random.normal(ks[9], (C,), jnp.float32) * 0.1,
        "bn2_var": jax.random.uniform(ks[10], (C,), jnp.float32, 0.5, 1.5),
    }

    out = jax.block_until_ready(basic_block_forward(x, params))
    ref = jax.block_until_ready(_ref_forward(x, w1_oihw, w2_oihw, params))

    assert out.shape == (N, C, H, W), out.shape
    # bf16 MXU operands (f32 accumulation) -> loosened tolerance vs the f32 ref.
    err = float(jnp.max(jnp.abs(out - ref)))
    assert jnp.allclose(out, ref, atol=5e-2, rtol=5e-2), err

    print("KERNEL_OK")
</pallas_src>

<mosaic_0001>
module attributes {stable_mosaic.version = 11 : i64} {
  func.func @_basic_block_kernel(%arg0: i32, %arg1: memref<2x16x128xbf16, #tpu.memory_space<vmem>>, %arg2: memref<3x128x128xbf16, #tpu.memory_space<vmem>>, %arg3: memref<3x128x128xbf16, #tpu.memory_space<vmem>>, %arg4: memref<2x128xf32, #tpu.memory_space<vmem>>, %arg5: memref<2x16x128xf32, #tpu.memory_space<vmem>>, %arg6: memref<36x128xf32, #tpu.memory_space<vmem>>, %arg7: memref<36x128xf32, #tpu.memory_space<vmem>>) attributes {dimension_semantics = [#tpu.dimension_semantics<parallel>], iteration_bounds = array<i64: 1>, scalar_prefetch = 0 : i64, scratch_operands = 2 : i64, tpu.core_type = #tpu.core_type<tc>, window_params = [{transform_indices = @transform_0, window_bounds = array<i64: 2, 16, 128>}, {pipeline_mode = #tpu.pipeline_mode<synchronous>, transform_indices = @transform_1, window_bounds = array<i64: 3, 128, 128>}, {pipeline_mode = #tpu.pipeline_mode<synchronous>, transform_indices = @transform_2, window_bounds = array<i64: 3, 128, 128>}, {pipeline_mode = #tpu.pipeline_mode<synchronous>, transform_indices = @transform_3, window_bounds = array<i64: 2, 128>}, {transform_indices = @transform_4, window_bounds = array<i64: 2, 16, 128>}]} {
    %cst = arith.constant 0.000000e+00 : f32
    %0 = vector.broadcast %cst : f32 to vector<1x128xf32>
    %cst_0 = arith.constant 0.000000e+00 : f32
    %1 = vector.broadcast %cst_0 : f32 to vector<1x128xf32>
    %c0 = arith.constant 0 : index
    %c0_1 = arith.constant 0 : index
    %2 = vector.load %arg6[%c0, %c0_1] : memref<36x128xf32, #tpu.memory_space<vmem>>, vector<1x128xf32>
    tpu.vector_store %arg6[%c0, %c0_1], %0 {strides = array<i32>} : memref<36x128xf32, #tpu.memory_space<vmem>>, vector<1x128xf32>,
    %c17 = arith.constant 17 : index
    %c0_2 = arith.constant 0 : index
    %3 = vector.load %arg6[%c17, %c0_2] : memref<36x128xf32, #tpu.memory_space<vmem>>, vector<1x128xf32>
    tpu.vector_store %arg6[%c17, %c0_2], %0 {strides = array<i32>} : memref<36x128xf32, #tpu.memory_space<vmem>>, vector<1x128xf32>,
    %c0_3 = arith.constant 0 : index
    %c0_4 = arith.constant 0 : index
    %4 = vector.load %arg7[%c0_3, %c0_4] : memref<36x128xf32, #tpu.memory_space<vmem>>, vector<1x128xf32>
    tpu.vector_store %arg7[%c0_3, %c0_4], %1 {strides = array<i32>} : memref<36x128xf32, #tpu.memory_space<vmem>>, vector<1x128xf32>,
    %c17_5 = arith.constant 17 : index
    %c0_6 = arith.constant 0 : index
    %5 = vector.load %arg7[%c17_5, %c0_6] : memref<36x128xf32, #tpu.memory_space<vmem>>, vector<1x128xf32>
    tpu.vector_store %arg7[%c17_5, %c0_6], %1 {strides = array<i32>} : memref<36x128xf32, #tpu.memory_space<vmem>>, vector<1x128xf32>,
    %c18 = arith.constant 18 : index
    %c0_7 = arith.constant 0 : index
    %6 = vector.load %arg6[%c18, %c0_7] : memref<36x128xf32, #tpu.memory_space<vmem>>, vector<1x128xf32>
    tpu.vector_store %arg6[%c18, %c0_7], %0 {strides = array<i32>} : memref<36x128xf32, #tpu.memory_space<vmem>>, vector<1x128xf32>,
    %c35 = arith.constant 35 : index
    %c0_8 = arith.constant 0 : index
    %7 = vector.load %arg6[%c35, %c0_8] : memref<36x128xf32, #tpu.memory_space<vmem>>, vector<1x128xf32>
    tpu.vector_store %arg6[%c35, %c0_8], %0 {strides = array<i32>} : memref<36x128xf32, #tpu.memory_space<vmem>>, vector<1x128xf32>,
    %c18_9 = arith.constant 18 : index
    %c0_10 = arith.constant 0 : index
    %8 = vector.load %arg7[%c18_9, %c0_10] : memref<36x128xf32, #tpu.memory_space<vmem>>, vector<1x128xf32>
    tpu.vector_store %arg7[%c18_9, %c0_10], %1 {strides = array<i32>} : memref<36x128xf32, #tpu.memory_space<vmem>>, vector<1x128xf32>,
    %c35_11 = arith.constant 35 : index
    %c0_12 = arith.constant 0 : index
    %9 = vector.load %arg7[%c35_11, %c0_12] : memref<36x128xf32, #tpu.memory_space<vmem>>, vector<1x128xf32>
    tpu.vector_store %arg7[%c35_11, %c0_12], %1 {strides = array<i32>} : memref<36x128xf32, #tpu.memory_space<vmem>>, vector<1x128xf32>,
    %c0_13 = arith.constant 0 : index
    %c0_14 = arith.constant 0 : index
    %c0_15 = arith.constant 0 : index
    %10 = vector.load %arg1[%c0_13, %c0_14, %c0_15] : memref<2x16x128xbf16, #tpu.memory_space<vmem>>, vector<1x16x128xbf16>
    %11 = vector.shape_cast %10 : vector<1x16x128xbf16> to vector<16x128xbf16>
    %12 = arith.extf %11 : vector<16x128xbf16> to vector<16x128xf32>
    %c1 = arith.constant 1 : index
    %c0_16 = arith.constant 0 : index
    %13 = vector.load %arg6[%c1, %c0_16] : memref<36x128xf32, #tpu.memory_space<vmem>>, vector<16x128xf32>
    tpu.vector_store %arg6[%c1, %c0_16], %12 {strides = array<i32>} : memref<36x128xf32, #tpu.memory_space<vmem>>, vector<16x128xf32>,
    %c1_17 = arith.constant 1 : index
    %c0_18 = arith.constant 0 : index
    %c0_19 = arith.constant 0 : index
    %14 = vector.load %arg1[%c1_17, %c0_18, %c0_19] : memref<2x16x128xbf16, #tpu.memory_space<vmem>>, vector<1x16x128xbf16>
    %15 = vector.shape_cast %14 : vector<1x16x128xbf16> to vector<16x128xbf16>
    %16 = arith.extf %15 : vector<16x128xbf16> to vector<16x128xf32>
    %c19 = arith.constant 19 : index
    %c0_20 = arith.constant 0 : index
    %17 = vector.load %arg6[%c19, %c0_20] : memref<36x128xf32, #tpu.memory_space<vmem>>, vector<16x128xf32>
    tpu.vector_store %arg6[%c19, %c0_20], %16 {strides = array<i32>} : memref<36x128xf32, #tpu.memory_space<vmem>>, vector<16x128xf32>,
    %cst_21 = arith.constant 0.000000e+00 : f32
    %18 = vector.broadcast %cst_21 : f32 to vector<34x128xf32>
    %c0_22 = arith.constant 0 : index
    %c0_23 = arith.constant 0 : index
    %19 = vector.load %arg6[%c0_22, %c0_23] : memref<36x128xf32, #tpu.memory_space<vmem>>, vector<34x128xf32>
    %20 = arith.truncf %19 : vector<34x128xf32> to vector<34x128xbf16>
    %c0_24 = arith.constant 0 : index
    %c0_25 = arith.constant 0 : index
    %c0_26 = arith.constant 0 : index
    %21 = vector.load %arg2[%c0_24, %c0_25, %c0_26] : memref<3x128x128xbf16, #tpu.memory_space<vmem>>, vector<1x128x128xbf16>
    %22 = vector.shape_cast %21 : vector<1x128x128xbf16> to vector<128x128xbf16>
    %cst_27 = arith.constant dense<0.000000e+00> : vector<34x128xf32>
    %23 = tpu.matmul %20, %22, %cst_27 {dimension_numbers = #tpu.dot_dimension_numbers<[1], [0], [0], [1], [0, 0, 1, 1], [], []>} : vector<34x128xbf16>, vector<128x128xbf16>, vector<34x128xf32> -> vector<34x128xf32>
    %24 = arith.addf %18, %23 : vector<34x128xf32>
    %c1_28 = arith.constant 1 : index
    %c0_29 = arith.constant 0 : index
    %25 = vector.load %arg6[%c1_28, %c0_29] : memref<36x128xf32, #tpu.memory_space<vmem>>, vector<34x128xf32>
    %26 = arith.truncf %25 : vector<34x128xf32> to vector<34x128xbf16>
    %c1_30 = arith.constant 1 : index
    %c0_31 = arith.constant 0 : index
    %c0_32 = arith.constant 0 : index
    %27 = vector.load %arg2[%c1_30, %c0_31, %c0_32] : memref<3x128x128xbf16, #tpu.memory_space<vmem>>, vector<1x128x128xbf16>
    %28 = vector.shape_cast %27 : vector<1x128x128xbf16> to vector<128x128xbf16>
    %cst_33 = arith.constant dense<0.000000e+00> : vector<34x128xf32>
    %29 = tpu.matmul %26, %28, %cst_33 {dimension_numbers = #tpu.dot_dimension_numbers<[1], [0], [0], [1], [0, 0, 1, 1], [], []>} : vector<34x128xbf16>, vector<128x128xbf16>, vector<34x128xf32> -> vector<34x128xf32>
    %30 = arith.addf %24, %29 : vector<34x128xf32>
    %c2 = arith.constant 2 : index
    %c0_34 = arith.constant 0 : index
    %31 = vector.load %arg6[%c2, %c0_34] : memref<36x128xf32, #tpu.memory_space<vmem>>, vector<34x128xf32>
    %32 = arith.truncf %31 : vector<34x128xf32> to vector<34x128xbf16>
    %c2_35 = arith.constant 2 : index
    %c0_36 = arith.constant 0 : index
    %c0_37 = arith.constant 0 : index
    %33 = vector.load %arg2[%c2_35, %c0_36, %c0_37] : memref<3x128x128xbf16, #tpu.memory_space<vmem>>, vector<1x128x128xbf16>
    %34 = vector.shape_cast %33 : vector<1x128x128xbf16> to vector<128x128xbf16>
    %cst_38 = arith.constant dense<0.000000e+00> : vector<34x128xf32>
    %35 = tpu.matmul %32, %34, %cst_38 {dimension_numbers = #tpu.dot_dimension_numbers<[1], [0], [0], [1], [0, 0, 1, 1], [], []>} : vector<34x128xbf16>, vector<128x128xbf16>, vector<34x128xf32> -> vector<34x128xf32>
    %36 = arith.addf %30, %35 : vector<34x128xf32>
    %c0_39 = arith.constant 0 : index
    %c0_40 = arith.constant 0 : index
    %37 = vector.load %arg4[%c0_39, %c0_40] : memref<2x128xf32, #tpu.memory_space<vmem>>, vector<1x128xf32>
    %38 = vector.broadcast %37 : vector<1x128xf32> to vector<34x128xf32>
    %39 = arith.addf %36, %38 : vector<34x128xf32>
    %cst_41 = arith.constant 0.000000e+00 : f32
    %40 = vector.broadcast %cst_41 : f32 to vector<34x128xf32>
    %41 = arith.maximumf %39, %40 : vector<34x128xf32>
    %42 = vector.extract_strided_slice %41 {offsets = [0, 0], sizes = [16, 128], strides = [1, 1]} : vector<34x128xf32> to vector<16x128xf32>
    %c1_42 = arith.constant 1 : index
    %c0_43 = arith.constant 0 : index
    %43 = vector.load %arg7[%c1_42, %c0_43] : memref<36x128xf32, #tpu.memory_space<vmem>>, vector<16x128xf32>
    tpu.vector_store %arg7[%c1_42, %c0_43], %42 {strides = array<i32>} : memref<36x128xf32, #tpu.memory_space<vmem>>, vector<16x128xf32>,
    %44 = vector.extract_strided_slice %41 {offsets = [18, 0], sizes = [16, 128], strides = [1, 1]} : vector<34x128xf32> to vector<16x128xf32>
    %c19_44 = arith.constant 19 : index
    %c0_45 = arith.constant 0 : index
    %45 = vector.load %arg7[%c19_44, %c0_45] : memref<36x128xf32, #tpu.memory_space<vmem>>, vector<16x128xf32>
    tpu.vector_store %arg7[%c19_44, %c0_45], %44 {strides = array<i32>} : memref<36x128xf32, #tpu.memory_space<vmem>>, vector<16x128xf32>,
    %cst_46 = arith.constant 0.000000e+00 : f32
    %46 = vector.broadcast %cst_46 : f32 to vector<34x128xf32>
    %c0_47 = arith.constant 0 : index
    %c0_48 = arith.constant 0 : index
    %47 = vector.load %arg7[%c0_47, %c0_48] : memref<36x128xf32, #tpu.memory_space<vmem>>, vector<34x128xf32>
    %48 = arith.truncf %47 : vector<34x128xf32> to vector<34x128xbf16>
    %c0_49 = arith.constant 0 : index
    %c0_50 = arith.constant 0 : index
    %c0_51 = arith.constant 0 : index
    %49 = vector.load %arg3[%c0_49, %c0_50, %c0_51] : memref<3x128x128xbf16, #tpu.memory_space<vmem>>, vector<1x128x128xbf16>
    %50 = vector.shape_cast %49 : vector<1x128x128xbf16> to vector<128x128xbf16>
    %cst_52 = arith.constant dense<0.000000e+00> : vector<34x128xf32>
    %51 = tpu.matmul %48, %50, %cst_52 {dimension_numbers = #tpu.dot_dimension_numbers<[1], [0], [0], [1], [0, 0, 1, 1], [], []>} : vector<34x128xbf16>, vector<128x128xbf16>, vector<34x128xf32> -> vector<34x128xf32>
    %52 = arith.addf %46, %51 : vector<34x128xf32>
    %c1_53 = arith.constant 1 : index
    %c0_54 = arith.constant 0 : index
    %53 = vector.load %arg7[%c1_53, %c0_54] : memref<36x128xf32, #tpu.memory_space<vmem>>, vector<34x128xf32>
    %54 = arith.truncf %53 : vector<34x128xf32> to vector<34x128xbf16>
    %c1_55 = arith.constant 1 : index
    %c0_56 = arith.constant 0 : index
    %c0_57 = arith.constant 0 : index
    %55 = vector.load %arg3[%c1_55, %c0_56, %c0_57] : memref<3x128x128xbf16, #tpu.memory_space<vmem>>, vector<1x128x128xbf16>
    %56 = vector.shape_cast %55 : vector<1x128x128xbf16> to vector<128x128xbf16>
    %cst_58 = arith.constant dense<0.000000e+00> : vector<34x128xf32>
    %57 = tpu.matmul %54, %56, %cst_58 {dimension_numbers = #tpu.dot_dimension_numbers<[1], [0], [0], [1], [0, 0, 1, 1], [], []>} : vector<34x128xbf16>, vector<128x128xbf16>, vector<34x128xf32> -> vector<34x128xf32>
    %58 = arith.addf %52, %57 : vector<34x128xf32>
    %c2_59 = arith.constant 2 : index
    %c0_60 = arith.constant 0 : index
    %59 = vector.load %arg7[%c2_59, %c0_60] : memref<36x128xf32, #tpu.memory_space<vmem>>, vector<34x128xf32>
    %60 = arith.truncf %59 : vector<34x128xf32> to vector<34x128xbf16>
    %c2_61 = arith.constant 2 : index
    %c0_62 = arith.constant 0 : index
    %c0_63 = arith.constant 0 : index
    %61 = vector.load %arg3[%c2_61, %c0_62, %c0_63] : memref<3x128x128xbf16, #tpu.memory_space<vmem>>, vector<1x128x128xbf16>
    %62 = vector.shape_cast %61 : vector<1x128x128xbf16> to vector<128x128xbf16>
    %cst_64 = arith.constant dense<0.000000e+00> : vector<34x128xf32>
    %63 = tpu.matmul %60, %62, %cst_64 {dimension_numbers = #tpu.dot_dimension_numbers<[1], [0], [0], [1], [0, 0, 1, 1], [], []>} : vector<34x128xbf16>, vector<128x128xbf16>, vector<34x128xf32> -> vector<34x128xf32>
    %64 = arith.addf %58, %63 : vector<34x128xf32>
    %c1_65 = arith.constant 1 : index
    %c0_66 = arith.constant 0 : index
    %65 = vector.load %arg4[%c1_65, %c0_66] : memref<2x128xf32, #tpu.memory_space<vmem>>, vector<1x128xf32>
    %66 = vector.broadcast %65 : vector<1x128xf32> to vector<34x128xf32>
    %67 = arith.addf %64, %66 : vector<34x128xf32>
    %68 = vector.extract_strided_slice %67 {offsets = [0, 0], sizes = [16, 128], strides = [1, 1]} : vector<34x128xf32> to vector<16x128xf32>
    %c0_67 = arith.constant 0 : index
    %c0_68 = arith.constant 0 : index
    %c0_69 = arith.constant 0 : index
    %69 = vector.load %arg1[%c0_67, %c0_68, %c0_69] : memref<2x16x128xbf16, #tpu.memory_space<vmem>>, vector<1x16x128xbf16>
    %70 = vector.shape_cast %69 : vector<1x16x128xbf16> to vector<16x128xbf16>
    %71 = arith.extf %70 : vector<16x128xbf16> to vector<16x128xf32>
    %72 = arith.addf %68, %71 : vector<16x128xf32>
    %cst_70 = arith.constant 0.000000e+00 : f32
    %73 = vector.broadcast %cst_70 : f32 to vector<16x128xf32>
    %74 = arith.maximumf %72, %73 : vector<16x128xf32>
    %c0_71 = arith.constant 0 : index
    %c0_72 = arith.constant 0 : index
    %c0_73 = arith.constant 0 : index
    %75 = vector.load %arg5[%c0_71, %c0_72, %c0_73] : memref<2x16x128xf32, #tpu.memory_space<vmem>>, vector<1x16x128xf32>
    %76 = vector.shape_cast %75 : vector<1x16x128xf32> to vector<16x128xf32>
    %77 = vector.shape_cast %74 : vector<16x128xf32> to vector<1x16x128xf32>
    tpu.vector_store %arg5[%c0_71, %c0_72, %c0_73], %77 {strides = array<i32>} : memref<2x16x128xf32, #tpu.memory_space<vmem>>, vector<1x16x128xf32>,
    %78 = vector.extract_strided_slice %67 {offsets = [18, 0], sizes = [16, 128], strides = [1, 1]} : vector<34x128xf32> to vector<16x128xf32>
    %c1_74 = arith.constant 1 : index
    %c0_75 = arith.constant 0 : index
    %c0_76 = arith.constant 0 : index
    %79 = vector.load %arg1[%c1_74, %c0_75, %c0_76] : memref<2x16x128xbf16, #tpu.memory_space<vmem>>, vector<1x16x128xbf16>
    %80 = vector.shape_cast %79 : vector<1x16x128xbf16> to vector<16x128xbf16>
    %81 = arith.extf %80 : vector<16x128xbf16> to vector<16x128xf32>
    %82 = arith.addf %78, %81 : vector<16x128xf32>
    %cst_77 = arith.constant 0.000000e+00 : f32
    %83 = vector.broadcast %cst_77 : f32 to vector<16x128xf32>
    %84 = arith.maximumf %82, %83 : vector<16x128xf32>
    %c1_78 = arith.constant 1 : index
    %c0_79 = arith.constant 0 : index
    %c0_80 = arith.constant 0 : index
    %85 = vector.load %arg5[%c1_78, %c0_79, %c0_80] : memref<2x16x128xf32, #tpu.memory_space<vmem>>, vector<1x16x128xf32>
    %86 = vector.shape_cast %85 : vector<1x16x128xf32> to vector<16x128xf32>
    %87 = vector.shape_cast %84 : vector<16x128xf32> to vector<1x16x128xf32>
    tpu.vector_store %arg5[%c1_78, %c0_79, %c0_80], %87 {strides = array<i32>} : memref<2x16x128xf32, #tpu.memory_space<vmem>>, vector<1x16x128xf32>,
    return
  }
  func.func @transform_0(%arg0: i32) -> (i32, i32, i32) {
    %c0_i32 = arith.constant 0 : i32
    %c0_i32_0 = arith.constant 0 : i32
    %c0_i32_1 = arith.constant 0 : i32
    return %arg0, %c0_i32, %c0_i32_0 : i32, i32, i32
  }
  func.func @transform_1(%arg0: i32) -> (i32, i32, i32) {
    %c0_i32 = arith.constant 0 : i32
    %c0_i32_0 = arith.constant 0 : i32
    %c0_i32_1 = arith.constant 0 : i32
    %c0_i32_2 = arith.constant 0 : i32
    return %c0_i32, %c0_i32_0, %c0_i32_1 : i32, i32, i32
  }
  func.func @transform_2(%arg0: i32) -> (i32, i32, i32) {
    %c0_i32 = arith.constant 0 : i32
    %c0_i32_0 = arith.constant 0 : i32
    %c0_i32_1 = arith.constant 0 : i32
    %c0_i32_2 = arith.constant 0 : i32
    return %c0_i32, %c0_i32_0, %c0_i32_1 : i32, i32, i32
  }
  func.func @transform_3(%arg0: i32) -> (i32, i32) {
    %c0_i32 = arith.constant 0 : i32
    %c0_i32_0 = arith.constant 0 : i32
    %c0_i32_1 = arith.constant 0 : i32
    return %c0_i32, %c0_i32_0 : i32, i32
  }
  func.func @transform_4(%arg0: i32) -> (i32, i32, i32) {
    %c0_i32 = arith.constant 0 : i32
    %c0_i32_0 = arith.constant 0 : i32
    %c0_i32_1 = arith.constant 0 : i32
    return %arg0, %c0_i32, %c0_i32_0 : i32, i32, i32
  }
}

</mosaic_0001>

<bundles_post_ra>
// kernel: tpu_custom_call.1
= control target key start
LH: loop header
LB: loop body
LE: loop exit
PB: predicated region body
PF: predicated region fallthrough
CT: control target
= control target key end

     0   :  { %9 = vsyncpa [#allocation5], 0  ;;  %s1618_s0 = inlined_call_operand.hbm [shape: bf16[2,16,128], index: 0, kind: input, shape index: {}]   ;;  %s1619_s1 = inlined_call_operand.hbm [shape: bf16[3,128,128], index: 1, kind: input, shape index: {}]   ;;  %s1620_s2 = inlined_call_operand.hbm [shape: bf16[3,128,128], index: 2, kind: input, shape index: {}]   ;;  %s1621_s3 = inlined_call_operand.vmem [shape: f32[2,128], index: 3, kind: input, shape index: {}]   ;;  %s1622_s4 = inlined_call_operand.hbm [shape: f32[2,16,128], index: 4, kind: output, shape index: {}]  }
   0x1   :  { %10 = vsyncpa [#allocation8], 0 }
   0x2   :  { %11 = vsyncpa [#allocation6], 0  ;;  %s1397_s15 = smov [#allocation7]   ;;  %s1398_s17 = smov [#allocation4]  }
   0x3   :  { %s29_s16 = sshll.u32 %s1397_s15, 4  ;;  %s17_s18 = sshll.u32 %s1398_s17, 4  ;;  %s30_s16 = int_to_ptr.vmem [resolvable:$true] %s29_s16  ;;  %s1432_s18 = int_to_ptr.vmem [resolvable:$true] %s17_s18 }
   0x4   :  { %s1303_s21 = scalar_lea.hbm %s1619_s1, 3072 }
   0x5   :  { %p1304_p0 = scmp.ne.s32.totalorder %s1619_s1, %s1303_s21  ;;  %p1307_p1 = scmp.lt.u32.totalorder %s1303_s21, %s1619_s1 }
   0x7   :  { %p1309_p2 = pnand %p1307_p1, %p1304_p0 }
   0x9   :  { %1312 = shalt.err (!%p1309_p2)
}
   0xa   :  { %s1313_s26 = scalar_lea.vmem %s30_s16, 3072  ;;  %p1318_p4 = scmp.lt.s32.totalorder %s30_s16, %s30_s16 }
   0xb   :  { %p1314_p3 = scmp.ne.s32.totalorder %s30_s16, %s1313_s26  ;;  %p1319_p5 = scmp.lt.s32.totalorder %s1313_s26, %s1313_s26 }
   0xd   :  { %p1320_p6 = por %p1319_p5, %p1318_p4 }
   0xf   :  { %p1321_p7 = pnand %p1320_p6, %p1314_p3 }
  0x11   :  { %1324 = shalt.err (!%p1321_p7)
}
  0x12   :  { %s1399_s27 = smov 64   ;;  %s1400_s28 = smov 4  }
  0x13   :  { %35 = dma.hbm_to_vmem [thread:$0]  %s1619_s1, 3072, %s30_s16, [#allocation8], %s1399_s27, %s1399_s27, %s1400_s28  }
  0x14   :  { %s1325_s7 = scalar_lea.hbm %s1618_s0, 256 }
  0x15   :  { %p1326_p8 = scmp.ne.s32.totalorder %s1618_s0, %s1325_s7  ;;  %p1329_p9 = scmp.lt.u32.totalorder %s1325_s7, %s1618_s0 }
  0x17   :  { %p1331_p10 = pnand %p1329_p9, %p1326_p8 }
  0x19   :  { %1334 = shalt.err (!%p1331_p10)
}
  0x1a   :  { %s1335_s12 = scalar_lea.vmem %s1432_s18, 256  ;;  %p1340_p12 = scmp.lt.s32.totalorder %s1432_s18, %s1432_s18 }
  0x1b   :  { %p1336_p11 = scmp.ne.s32.totalorder %s1432_s18, %s1335_s12  ;;  %p1341_p13 = scmp.lt.s32.totalorder %s1335_s12, %s1335_s12 }
  0x1d   :  { %p1342_p0 = por %p1341_p13, %p1340_p12 }
  0x1f   :  { %p1343_p1 = pnand %p1342_p0, %p1336_p11 }
  0x21   :  { %1346 = shalt.err (!%p1343_p1)
}
  0x22   :  { %23 = dma.hbm_to_vmem [thread:$0]  %s1618_s0, 256, %s1432_s18, [#allocation5], %s1399_s27, %s1399_s27, %s1400_s28  }
  0x23   :  { %s1401_s14 = smov [#allocation9]   ;;  %s1347_s19 = scalar_lea.hbm %s1620_s2, 3072 }
  0x24   :  { %s41_s15 = sshll.u32 %s1401_s14, 4  ;;  %p1348_p2 = scmp.ne.s32.totalorder %s1620_s2, %s1347_s19  ;;  %s42_s15 = int_to_ptr.vmem [resolvable:$true] %s41_s15 }
  0x25   :  { %p1351_p3 = scmp.lt.u32.totalorder %s1347_s19, %s1620_s2 }
  0x27   :  { %p1353_p4 = pnand %p1351_p3, %p1348_p2 }
  0x29   :  { %1356 = shalt.err (!%p1353_p4)
}
  0x2a   :  { %s1357_s24 = scalar_lea.vmem %s42_s15, 3072  ;;  %p1362_p6 = scmp.lt.s32.totalorder %s42_s15, %s42_s15 }
  0x2b   :  { %p1358_p5 = scmp.ne.s32.totalorder %s42_s15, %s1357_s24  ;;  %p1363_p7 = scmp.lt.s32.totalorder %s1357_s24, %s1357_s24 }
  0x2d   :  { %p1364_p8 = por %p1363_p7, %p1362_p6 }
  0x2f   :  { %p1365_p9 = pnand %p1364_p8, %p1358_p5 }
  0x31   :  { %1368 = shalt.err (!%p1365_p9)
}
  0x32   :  { %47 = dma.hbm_to_vmem [thread:$0]  %s1620_s2, 3072, %s42_s15, [#allocation8], %s1399_s27, %s1399_s27, %s1400_s28  }
  0x33   :  { %1391 = dma.done.wait [#allocation5], 256  }
  0x34   :  { %1392 = vsyncadd [#allocation5], 4294967040 }
  0x35   :  { %1393 = dma.done.wait [#allocation8], 6144  }
  0x36   :  { %1394 = vsyncadd [#allocation8], 4294961152  ;;  %v1402_v0 = vmov 0.0   ;;  %vm1403_vm0 = vmmov 0   ;;  %v1254_v1 = vld [vmem:[#allocation7 + $0x40] sm:$0xff]   ;;  %v1256_v3 = vld [vmem:[#allocation7 + $0x48] sm:$0xff]  }
  0x37   :  { %1076 = vmatprep.subr.bf16.mxu0 %v1402_v0  ;;  %60 = vst [vmem:[#allocation2] sm:$0x1] %v1402_v0  ;;  %61 = vst [vmem:[#allocation2 + $0x11] sm:$0x1] %v1402_v0  ;;  %1104 = vmatprep.subr.bf16.mxu1 %v1402_v0  ;;  %v1255_v2 = vld [vmem:[#allocation7] sm:$0xff]   ;;  %v1257_v4 = vld [vmem:[#allocation7 + $0x8] sm:$0xff]  }
  0x38   :  { %62 = vst [vmem:[#allocation3] sm:$0x1] %v1402_v0  ;;  %63 = vst [vmem:[#allocation3 + $0x11] sm:$0x1] %v1402_v0  ;;  %1092 = vmatprep.mubr.msk.bf16.mxu0 %vm1403_vm0, %v1402_v0  ;;  %1120 = vmatprep.mubr.msk.bf16.mxu1 %vm1403_vm0, %v1402_v0  ;;  %v1258_v5 = vld [vmem:[#allocation7 + $0x50] sm:$0xff]   ;;  %v1260_v7 = vld [vmem:[#allocation7 + $0x58] sm:$0xff]  }
  0x39   :  { %64 = vst [vmem:[#allocation2 + $0x12] sm:$0x1] %v1402_v0  ;;  %65 = vst [vmem:[#allocation2 + $0x23] sm:$0x1] %v1402_v0  ;;  %1077 = vmatpush3.bf16.msra.mxu0 %v1254_v1  ;;  %1105 = vmatpush3.bf16.msra.mxu1 %v1255_v2  ;;  %v1259_v6 = vld [vmem:[#allocation7 + $0x10] sm:$0xff]   ;;  %v1261_v8 = vld [vmem:[#allocation7 + $0x18] sm:$0xff]  }
  0x3a   :  { %66 = vst [vmem:[#allocation3 + $0x12] sm:$0x1] %v1402_v0  ;;  %67 = vst [vmem:[#allocation3 + $0x23] sm:$0x1] %v1402_v0  ;;  %1078 = vmatprep.subr.bf16.mxu0 %v1402_v0  ;;  %1106 = vmatprep.subr.bf16.mxu1 %v1402_v0  ;;  %v1262_v9 = vld [vmem:[#allocation7 + $0x60] sm:$0xff]   ;;  %v1506_v11 = vld [vmem:[#allocation4] sm:$0xff]  }
  0x3b   :  { %v1263_v10 = vld [vmem:[#allocation7 + $0x20] sm:$0xff]   ;;  %v996_v12 = vunpack.c.l.bf16 %v1506_v11  ;;  %v997_v13 = vunpack.c.h.bf16 %v1506_v11  ;;  %v1264_v14 = vld [vmem:[#allocation7 + $0x68] sm:$0xff]   ;;  %v1515_v16 = vld [vmem:[#allocation4 + $0x8] sm:$0xff]   ;;  %vm909_vm1 = vcmask 1041408  }
  0x3c   :  { %v1265_v15 = vld [vmem:[#allocation7 + $0x28] sm:$0xff]   ;;  %v1000_v17 = vunpack.c.l.bf16 %v1515_v16  ;;  %v1001_v18 = vunpack.c.h.bf16 %v1515_v16  ;;  %v1266_v19 = vld [vmem:[#allocation7 + $0x70] sm:$0xff]   ;;  %v1268_v21 = vld [vmem:[#allocation7 + $0x78] sm:$0xff]  }
  0x3d   :  { %1079 = vmatpush3.bf16.msra.mxu0 %v1256_v3  ;;  %1107 = vmatpush3.bf16.msra.mxu1 %v1257_v4  ;;  %72 = vst [vmem:[#allocation2 + $0x1] sm:$0xff] %v996_v12  ;;  %73 = vst [vmem:[#allocation2 + $0x9] sm:$0xff] %v997_v13  ;;  %v1267_v20 = vld [vmem:[#allocation7 + $0x30] sm:$0xff]   ;;  %v1269_v22 = vld [vmem:[#allocation7 + $0x38] sm:$0xff]  }
  0x3e   :  { %1080 = vmatprep.subr.bf16.mxu0 %v1402_v0  ;;  %1108 = vmatprep.subr.bf16.mxu1 %v1402_v0  ;;  %79 = vst [vmem:[#allocation2 + $0x13] sm:$0xff] %v1000_v17  ;;  %80 = vst [vmem:[#allocation2 + $0x1b] sm:$0xff] %v1001_v18  ;;  %v1270_v25 = vld [vmem:[#allocation4] sm:$0xff]  ;;  %v1271_v27 = vld [vmem:[#allocation7 + $0x80] sm:$0xff]  }
  0x3f   :  { %v1272_v28 = vld [vmem:[#allocation7 + $0x88] sm:$0xff]   ;;  %v1273_v33 = vld [vmem:[#allocation7 + $0x90] sm:$0xff]   ;;  %v1274_v36 = vld [vmem:[#allocation7 + $0x98] sm:$0xff]  }
  0x40   :  { %v1275_v40 = vld [vmem:[#allocation7 + $0xa0] sm:$0xff]   ;;  %v1276_v42 = vld [vmem:[#allocation7 + $0xa8] sm:$0xff]   ;;  %v1277_v43 = vld [vmem:[#allocation7 + $0xb0] sm:$0xff]  }
  0x41   :  { %1081 = vmatpush3.bf16.msra.mxu0 %v1258_v5  ;;  %1109 = vmatpush3.bf16.msra.mxu1 %v1259_v6  ;;  %v1278_v44 = vld [vmem:[#allocation7 + $0xb8] sm:$0xff]   ;;  %v1279_v53 = vld [vmem:[#allocation9 + $0x40] sm:$0xff]   ;;  %v1281_v55 = vld [vmem:[#allocation9 + $0x48] sm:$0xff]  }
  0x42   :  { %1082 = vmatprep.subr.bf16.mxu0 %v1402_v0  ;;  %1110 = vmatprep.subr.bf16.mxu1 %v1402_v0  ;;  %v1280_v54 = vld [vmem:[#allocation9] sm:$0xff]   ;;  %v1283_v56 = vld [vmem:[#allocation9 + $0x50] sm:$0xff]   ;;  %v1282_v57 = vld [vmem:[#allocation9 + $0x8] sm:$0xff]  }
  0x43   :  { %v1285_v58 = vld [vmem:[#allocation9 + $0x58] sm:$0xff]   ;;  %v1284_v59 = vld [vmem:[#allocation9 + $0x10] sm:$0xff]   ;;  %v1287_v60 = vld [vmem:[#allocation9 + $0x60] sm:$0xff]  }
  0x44   :  { %v81_v23 = vld [vmem:[#allocation2] sm:$0xff]  ;;  %v82_v24 = vld [vmem:[#allocation2 + $0x8] sm:$0xff]  ;;  %v1286_v62 = vld [vmem:[#allocation9 + $0x18] sm:$0xff]  }
  0x45   :  { %1083 = vmatpush3.bf16.msra.mxu0 %v1260_v7  ;;  %1111 = vmatpush3.bf16.msra.mxu1 %v1261_v8  ;;  %v86_v26 = vpack.c.bf16 %v82_v24, %v81_v23  ;;  %v107_v29 = vld [vmem:[#allocation2 + $0x11] sm:$0xff]  ;;  %v108_v30 = vld [vmem:[#allocation2 + $0x19] sm:$0xff]  ;;  %v109_v37 = vld [vmem:[#allocation2 + $0x21] sm:$0x3] }
  0x46   :  { %1084 = vmatprep.subr.bf16.mxu0 %v1402_v0  ;;  %1112 = vmatprep.subr.bf16.mxu1 %v1402_v0  ;;  %v83_v31 = vld [vmem:[#allocation2 + $0x10] sm:$0xff]  ;;  %v84_v32 = vld [vmem:[#allocation2 + $0x18] sm:$0xff]  ;;  %v111_v34 = vpack.c.bf16 %v108_v30, %v107_v29  ;;  %v85_v38 = vld [vmem:[#allocation2 + $0x20] sm:$0x3]  ;;  %v112_v39 = vpack.c.bf16 %v109_v37, %v109_v37 }
  0x47   :  { %v87_v35 = vpack.c.bf16 %v84_v32, %v83_v31  ;;  %v88_v41 = vpack.c.bf16 %v85_v38, %v85_v38  ;;  %v338_v45 = vld [vmem:[#allocation2 + $0x2] sm:$0xff]  ;;  %v339_v46 = vld [vmem:[#allocation2 + $0xa] sm:$0xff]  ;;  %v340_v48 = vld [vmem:[#allocation2 + $0x12] sm:$0xff] }
  0x48   :  { %v343_v47 = vpack.c.bf16 %v339_v46, %v338_v45  ;;  %v341_v49 = vld [vmem:[#allocation2 + $0x1a] sm:$0xff]  ;;  %v342_v51 = vld [vmem:[#allocation2 + $0x22] sm:$0x3]  ;;  %v1289_v61 = vld [vmem:[#allocation9 + $0x68] sm:$0xff]  }
  0x49   :  { %1085 = vmatpush3.bf16.msra.mxu0 %v1262_v9  ;;  %1113 = vmatpush3.bf16.msra.mxu1 %v1263_v10  ;;  %v344_v50 = vpack.c.bf16 %v341_v49, %v340_v48  ;;  %v345_v52 = vpack.c.bf16 %v342_v51, %v342_v51  ;;  %v1291_v63 = vld [vmem:[#allocation9 + $0x70] sm:$0xff]   ;;  %v1288_v1 = vld [vmem:[#allocation9 + $0x20] sm:$0xff]   ;;  %v1293_v2 = vld [vmem:[#allocation9 + $0x78] sm:$0xff]  }
  0x4a   :  { %1086 = vmatprep.subr.bf16.mxu0 %v1402_v0  ;;  %1114 = vmatprep.subr.bf16.mxu1 %v1402_v0  ;;  %v1290_v3 = vld [vmem:[#allocation9 + $0x28] sm:$0xff]   ;;  %v1292_v4 = vld [vmem:[#allocation9 + $0x30] sm:$0xff]   ;;  %v1294_v5 = vld [vmem:[#allocation9 + $0x38] sm:$0xff]  }
  0x4d   :  { %1087 = vmatpush3.bf16.msra.mxu0 %v1264_v14  ;;  %1115 = vmatpush3.bf16.msra.mxu1 %v1265_v15 }
  0x4e   :  { %1088 = vmatprep.subr.bf16.mxu0 %v1402_v0  ;;  %1116 = vmatprep.subr.bf16.mxu1 %v1402_v0 }
  0x51   :  { %1089 = vmatpush3.bf16.msra.mxu0 %v1266_v19  ;;  %1117 = vmatpush3.bf16.msra.mxu1 %v1267_v20 }
  0x52   :  { %1090 = vmatprep.subr.bf16.mxu0 %v1402_v0  ;;  %1118 = vmatprep.subr.bf16.mxu1 %v1402_v0 }
  0x55   :  { %1091 = vmatpush3.bf16.msra.mxu0 %v1268_v21  ;;  %1119 = vmatpush3.bf16.msra.mxu1 %v1269_v22 }
  0x56   :  { %1132 = vmatprep.subr.bf16.mxu0 %v1402_v0  ;;  %1160 = vmatprep.subr.bf16.mxu1 %v1402_v0 }
  0x58   :  { %1093 = vmatmul.mubr.bf16.vlgmr.msra.gmra.mrb[0].mxu0 %v1270_v25  ;;  %1121 = vmatmul.mubr.bf16.vlgmr.msra.gmra.mrb[0].mxu1 %v86_v26 }
  0x59   :  { %1133 = vmatpush3.bf16.msra.mxu0 %v1271_v27  ;;  %1096 = vmatprep.mubr.msk.bf16.mxu0 %vm1403_vm0, %v1402_v0 }
  0x5a   :  { %1134 = vmatprep.subr.bf16.mxu0 %v1402_v0  ;;  %1124 = vmatprep.mubr.msk.bf16.mxu1 %vm1403_vm0, %v1402_v0 }
  0x5b   :  { %1161 = vmatpush3.bf16.msra.mxu1 %v1279_v53  ;;  %v1295_v53 = vld [vmem:[#allocation9 + $0x80] sm:$0xff]  }
  0x5c   :  { %1162 = vmatprep.subr.bf16.mxu1 %v1402_v0 }
  0x5d   :  { %1135 = vmatpush3.bf16.msra.mxu0 %v1272_v28 }
  0x5e   :  { %1136 = vmatprep.subr.bf16.mxu0 %v1402_v0 }
  0x5f   :  { %1163 = vmatpush3.bf16.msra.mxu1 %v1281_v55 }
  0x60   :  { %1097 = vmatmul.mubr.bf16.gmra.mrb[4].mxu0 %v111_v34  ;;  %1125 = vmatmul.mubr.bf16.gmra.mrb[4].mxu1 %v87_v35 }
  0x61   :  { %1137 = vmatpush3.bf16.msra.mxu0 %v1273_v33  ;;  %1100 = vmatprep.mubr.msk.bf16.mxu0 %vm1403_vm0, %v1402_v0 }
  0x62   :  { %1138 = vmatprep.subr.bf16.mxu0 %v1402_v0  ;;  %1128 = vmatprep.mubr.msk.bf16.mxu1 %vm1403_vm0, %v1402_v0 }
  0x63   :  { %1164 = vmatprep.subr.bf16.mxu1 %v1402_v0 }
  0x64   :  { %1165 = vmatpush3.bf16.msra.mxu1 %v1283_v56 }
  0x65   :  { %1139 = vmatpush3.bf16.msra.mxu0 %v1274_v36  ;;  %1166 = vmatprep.subr.bf16.mxu1 %v1402_v0 }
  0x66   :  { %1140 = vmatprep.subr.bf16.mxu0 %v1402_v0 }
  0x68   :  { %1101 = vmatmul.mubr.bf16.gmra.mrb[8].mxu0 %v112_v39  ;;  %1129 = vmatmul.mubr.bf16.gmra.mrb[8].mxu1 %v88_v41 }
  0x69   :  { %1141 = vmatpush3.bf16.msra.mxu0 %v1275_v40  ;;  %1148 = vmatprep.mubr.msk.bf16.mxu0 %vm1403_vm0, %v1402_v0 }
  0x6a   :  { %1142 = vmatprep.subr.bf16.mxu0 %v1402_v0  ;;  %1176 = vmatprep.mubr.msk.bf16.mxu1 %vm1403_vm0, %v1402_v0 }
  0x6b   :  { %1167 = vmatpush3.bf16.msra.mxu1 %v1285_v58 }
  0x6c   :  { %1168 = vmatprep.subr.bf16.mxu1 %v1402_v0 }
  0x6d   :  { %1143 = vmatpush3.bf16.msra.mxu0 %v1276_v42  ;;  %v968_v42 = vld [vmem:[%s1621_s3] ss:$0 sm:$0xff] }
  0x6e   :  { %1144 = vmatprep.subr.bf16.mxu0 %v1402_v0 }
  0x6f   :  { %1169 = vmatpush3.bf16.msra.mxu1 %v1287_v60 }
  0x70   :  { %1170 = vmatprep.subr.bf16.mxu1 %v1402_v0 }
  0x71   :  { %1145 = vmatpush3.bf16.msra.mxu0 %v1277_v43 }
  0x72   :  { %1146 = vmatprep.subr.bf16.mxu0 %v1402_v0 }
  0x73   :  { %1171 = vmatpush3.bf16.msra.mxu1 %v1289_v61  ;;  %v1296_v61 = vld [vmem:[#allocation9 + $0x88] sm:$0xff]  }
  0x74   :  { %1172 = vmatprep.subr.bf16.mxu1 %v1402_v0 }
  0x75   :  { %1147 = vmatpush3.bf16.msra.mxu0 %v1278_v44 }
  0x76   :  { %1188 = vmatprep.subr.bf16.mxu0 %v1402_v0 }
  0x77   :  { %1173 = vmatpush3.bf16.msra.mxu1 %v1291_v63 }
  0x78   :  { %1149 = vmatmul.mubr.bf16.vlgmr.msra.gmra.mrb[12].mxu0 %v343_v47  ;;  %1174 = vmatprep.subr.bf16.mxu1 %v1402_v0 }
  0x79   :  { %1152 = vmatprep.mubr.msk.bf16.mxu0 %vm1403_vm0, %v1402_v0  ;;  %1189 = vmatpush3.bf16.msra.mxu0 %v1280_v54 }
  0x7a   :  { %1190 = vmatprep.subr.bf16.mxu0 %v1402_v0 }
  0x7b   :  { %1175 = vmatpush3.bf16.msra.mxu1 %v1293_v2 }
  0x7c   :  { %1216 = vmatprep.subr.bf16.mxu1 %v1402_v0 }
  0x7d   :  { %1191 = vmatpush3.bf16.msra.mxu0 %v1282_v57 }
  0x7e   :  { %1192 = vmatprep.subr.bf16.mxu0 %v1402_v0 }
  0x80   :  { %1153 = vmatmul.mubr.bf16.gmra.mrb[16].mxu0 %v344_v50 }
  0x81   :  { %1156 = vmatprep.mubr.msk.bf16.mxu0 %vm1403_vm0, %v1402_v0  ;;  %1193 = vmatpush3.bf16.msra.mxu0 %v1284_v59 }
  0x82   :  { %1194 = vmatprep.subr.bf16.mxu0 %v1402_v0 }
  0x85   :  { %1195 = vmatpush3.bf16.msra.mxu0 %v1286_v62 }
  0x86   :  { %1196 = vmatprep.subr.bf16.mxu0 %v1402_v0 }
  0x88   :  { %1157 = vmatmul.mubr.bf16.gmra.mrb[20].mxu0 %v345_v52 }
  0x89   :  { %1204 = vmatprep.mubr.msk.bf16.mxu0 %vm1403_vm0, %v1402_v0  ;;  %1197 = vmatpush3.bf16.msra.mxu0 %v1288_v1 }
  0x8a   :  { %1198 = vmatprep.subr.bf16.mxu0 %v1402_v0 }
  0x8d   :  { %1199 = vmatpush3.bf16.msra.mxu0 %v1290_v3 }
  0x8e   :  { %1200 = vmatprep.subr.bf16.mxu0 %v1402_v0 }
  0x91   :  { %1201 = vmatpush3.bf16.msra.mxu0 %v1292_v4 }
  0x92   :  { %1202 = vmatprep.subr.bf16.mxu0 %v1402_v0 }
  0x95   :  { %1203 = vmatpush3.bf16.msra.mxu0 %v1294_v5  ;;  %v1297_v5 = vld [vmem:[#allocation9 + $0x90] sm:$0xff]  }
 0x12b   :  { %v212_v6 = vpop.f32.mrb[0].mxu0  ;;  %v316_v7 = vpop.f32.mrb[0].mxu1 }
 0x12c   :  { %v1094_v8 = vpop.f32.mrb[1].mxu0  ;;  %v317_v9 = vadd.f32 %v316_v7, %v212_v6  ;;  %v1122_v10 = vpop.f32.mrb[1].mxu1 }
 0x12d   :  { %v215_v14 = vpop.f32.mrb[2].mxu0  ;;  %v319_v15 = vpop.f32.mrb[2].mxu1 }
 0x12e   :  { %v1095_v19 = vpop.f32.mrb[3].mxu0  ;;  %v320_v20 = vadd.f32 %v319_v15, %v215_v14  ;;  %v1123_v21 = vpop.f32.mrb[3].mxu1  ;;  %v1298_v15 = vld [vmem:[#allocation9 + $0x98] sm:$0xff]  }
 0x133   :  { %v220_v22 = vpop.f32.mrb[4].mxu0  ;;  %v324_v24 = vpop.f32.mrb[4].mxu1 }
 0x134   :  { %v1098_v23 = vpop.f32.mrb[5].mxu0  ;;  %v325_v25 = vadd.f32 %v324_v24, %v220_v22  ;;  %v1126_v27 = vpop.f32.mrb[5].mxu1  ;;  %v1299_v24 = vld [vmem:[#allocation9 + $0xa0] sm:$0xff]  }
 0x135   :  { %v223_v26 = vpop.f32.mrb[6].mxu0  ;;  %v327_v29 = vpop.f32.mrb[6].mxu1 }
 0x136   :  { %v1099_v28 = vpop.f32.mrb[7].mxu0  ;;  %v328_v30 = vadd.f32 %v327_v29, %v223_v26  ;;  %v1127_v31 = vpop.f32.mrb[7].mxu1  ;;  %v1300_v26 = vld [vmem:[#allocation9 + $0xa8] sm:$0xff]  }
 0x13b   :  { %v228_v32 = vpop.f32.mrb[8].mxu0  ;;  %v332_v34 = vpop.f32.mrb[8].mxu1 }
 0x13c   :  { %v1102_v33 = vpop.f32.mrb[9].mxu0  ;;  %v333_v36 = vadd.f32 %v332_v34, %v228_v32  ;;  %v1130_v37 = vpop.f32.mrb[9].mxu1  ;;  %v1302_v32 = vld [vmem:[#allocation9 + $0xb8] sm:$0xff]  }
 0x13d   :  { %v231_v35 = vpop.f32.mrb[10].mxu0  ;;  %v335_v39 = vpop.f32.mrb[10].mxu1 }
 0x13e   :  { %v1103_v38 = vpop.f32.mrb[11].mxu0  ;;  %v1131_v40 = vpop.f32.mrb[11].mxu1 }
 0x14b   :  { %v445_v41 = vpop.f32.mrb[12].mxu0 }
 0x14c   :  { %v467_v43 = vadd.f32 %v445_v41, %v317_v9  ;;  %v1150_v44 = vpop.f32.mrb[13].mxu0 }
 0x14d   :  { %v448_v45 = vpop.f32.mrb[14].mxu0 }
 0x14e   :  { %v477_v46 = vadd.f32 %v968_v42, %v467_v43  ;;  %v468_v47 = vadd.f32 %v448_v45, %v320_v20  ;;  %v1151_v48 = vpop.f32.mrb[15].mxu0 }
 0x150   :  { %v482_v49 = vmax.f32 %v477_v46, 0.0  ;;  %v478_v50 = vadd.f32 %v968_v42, %v468_v47 }
 0x152   :  { %487 = vst [vmem:[#allocation3 + $0x1] sm:$0xff] %v482_v49  ;;  %v483_v51 = vmax.f32 %v478_v50, 0.0 }
 0x153   :  { %v453_v52 = vpop.f32.mrb[16].mxu0 }
 0x154   :  { %488 = vst [vmem:[#allocation3 + $0x9] sm:$0xff] %v483_v51  ;;  %v469_v54 = vadd.f32 %v453_v52, %v325_v25  ;;  %v1154_v55 = vpop.f32.mrb[17].mxu0  ;;  %v521_v56 = vpack.c.bf16 %v483_v51, %v482_v49 }
 0x155   :  { %v456_v57 = vpop.f32.mrb[18].mxu0 }
 0x156   :  { %v479_v58 = vadd.f32 %v968_v42, %v469_v54  ;;  %v470_v59 = vadd.f32 %v456_v57, %v328_v30  ;;  %v1155_v60 = vpop.f32.mrb[19].mxu0  ;;  %1177 = vmatmul.mubr.bf16.vlgmr.msra.gmra.mrb[12].mxu1 %v521_v56  ;;  %v1301_v30 = vld [vmem:[#allocation9 + $0xb0] sm:$0xff]  }
 0x157   :  { %1217 = vmatpush3.bf16.msra.mxu1 %v1295_v53  ;;  %1180 = vmatprep.mubr.msk.bf16.mxu1 %vm1403_vm0, %v1402_v0 }
 0x158   :  { %v484_v62 = vmax.f32 %v479_v58, 0.0  ;;  %v480_v63 = vadd.f32 %v968_v42, %v470_v59  ;;  %1218 = vmatprep.subr.bf16.mxu1 %v1402_v0 }
 0x159   :  { %v492_v3 = vld [vmem:[#allocation3] sm:$0xff] }
 0x15a   :  { %489 = vst [vmem:[#allocation3 + $0x11] sm:$0xfc] %v484_v62  ;;  %v485_v1 = vmax.f32 %v480_v63, 0.0 }
 0x15b   :  { %v461_v2 = vpop.f32.mrb[20].mxu0  ;;  %v493_v4 = vld [vmem:[#allocation3 + $0x8] sm:$0xff]  ;;  %1219 = vmatpush3.bf16.msra.mxu1 %v1296_v61 }
 0x15c   :  { %490 = vst [vmem:[#allocation3 + $0x19] sm:$0xff] %v485_v1  ;;  %v471_v6 = vadd.f32 %v461_v2, %v333_v36  ;;  %v497_v7 = vpack.c.bf16 %v493_v4, %v492_v3  ;;  %v1158_v8 = vpop.f32.mrb[21].mxu0  ;;  %1220 = vmatprep.subr.bf16.mxu1 %v1402_v0  ;;  %v749_v33 = vld [vmem:[#allocation3 + $0x2] sm:$0xff]  ;;  %v750_v34 = vld [vmem:[#allocation3 + $0xa] sm:$0xff] }
 0x15d   :  { %v464_v9 = vpop.f32.mrb[22].mxu0  ;;  %v754_v35 = vpack.c.bf16 %v750_v34, %v749_v33 }
 0x15e   :  { %v481_v10 = vadd.f32 %v968_v42, %v471_v6  ;;  %1205 = vmatmul.mubr.bf16.vlgmr.msra.gmra.mrb[24].mxu0 %v497_v7  ;;  %v1159_v14 = vpop.f32.mrb[23].mxu0  ;;  %v993_v7 = vld [vmem:[%s1621_s3 + $0x1] ss:$0 sm:$0xff]  ;;  %s1404_s3 = smov [#allocation10]  }
 0x15f   :  { %1208 = vmatprep.mubr.msk.bf16.mxu0 %vm1403_vm0, %v1402_v0  ;;  %1221 = vmatpush3.bf16.msra.mxu1 %v1297_v5  ;;  %s931_s28 = sshll.u32 %s1404_s3, 4  ;;  %s932_s28 = int_to_ptr.vmem [resolvable:$true] %s931_s28 }
 0x160   :  { %v486_v19 = vmax.f32 %v481_v10, 0.0  ;;  %1222 = vmatprep.subr.bf16.mxu1 %v1402_v0  ;;  %s1369_s29 = scalar_lea.vmem %s932_s28, 512  ;;  %p1374_p11 = scmp.lt.s32.totalorder %s932_s28, %s932_s28 }
 0x161   :  { %v518_v20 = vld [vmem:[#allocation3 + $0x11] sm:$0xff]  ;;  %p1370_p10 = scmp.ne.s32.totalorder %s932_s28, %s1369_s29  ;;  %p1375_p12 = scmp.lt.s32.totalorder %s1369_s29, %s1369_s29 }
 0x162   :  { %491 = vst [vmem:[#allocation3 + $0x21] sm:$0x3] %v486_v19  ;;  %v522_v21 = vpack.c.bf16 %v485_v1, %v518_v20  ;;  %v494_v22 = vld [vmem:[#allocation3 + $0x10] sm:$0xff] }
 0x163   :  { %v495_v23 = vld [vmem:[#allocation3 + $0x18] sm:$0xff]  ;;  %1223 = vmatpush3.bf16.msra.mxu1 %v1298_v15  ;;  %p1376_p13 = por %p1375_p12, %p1374_p11 }
 0x164   :  { %1181 = vmatmul.mubr.bf16.gmra.mrb[16].mxu1 %v522_v21  ;;  %v498_v25 = vpack.c.bf16 %v495_v23, %v494_v22  ;;  %1224 = vmatprep.subr.bf16.mxu1 %v1402_v0  ;;  %v751_v37 = vld [vmem:[#allocation3 + $0x12] sm:$0xff] }
 0x165   :  { %1184 = vmatprep.mubr.msk.bf16.mxu1 %vm1403_vm0, %v1402_v0  ;;  %p1377_p0 = pnand %p1376_p13, %p1370_p10 }
 0x166   :  { %1209 = vmatmul.mubr.bf16.gmra.mrb[28].mxu0 %v498_v25  ;;  %v910_v25 = vrot.slane %v1000_v17, 6 }
 0x167   :  { %1212 = vmatprep.mubr.msk.bf16.mxu0 %vm1403_vm0, %v1402_v0  ;;  %1225 = vmatpush3.bf16.msra.mxu1 %v1299_v24 }
 0x168   :  { %1226 = vmatprep.subr.bf16.mxu1 %v1402_v0 }
 0x169   :  { %v520_v27 = vld [vmem:[#allocation3 + $0x21] sm:$0x3] }
 0x16a   :  { %v496_v28 = vld [vmem:[#allocation3 + $0x20] sm:$0x3]  ;;  %v523_v29 = vpack.c.bf16 %v520_v27, %v520_v27  ;;  %v753_v39 = vld [vmem:[#allocation3 + $0x22] sm:$0x3] }
 0x16b   :  { %1227 = vmatpush3.bf16.msra.mxu1 %v1300_v26  ;;  %v499_v31 = vpack.c.bf16 %v496_v28, %v496_v28  ;;  %v752_v36 = vld [vmem:[#allocation3 + $0x1a] sm:$0xff]  ;;  %v756_v40 = vpack.c.bf16 %v753_v39, %v753_v39  ;;  %v911_v26 = vrot.slane %v1001_v18, 6 }
 0x16c   :  { %1185 = vmatmul.mubr.bf16.gmra.mrb[20].mxu1 %v523_v29  ;;  %1228 = vmatprep.subr.bf16.mxu1 %v1402_v0  ;;  %v755_v38 = vpack.c.bf16 %v752_v36, %v751_v37 }
 0x16d   :  { %1232 = vmatprep.mubr.msk.bf16.mxu1 %vm1403_vm0, %v1402_v0  ;;  %v912_v33 = vsel %vm909_vm1, %v910_v25, %v911_v26 }
 0x16e   :  { %1213 = vmatmul.mubr.bf16.gmra.mrb[32].mxu0 %v499_v31 }
 0x16f   :  { %1229 = vmatpush3.bf16.msra.mxu1 %v1301_v30 }
 0x170   :  { %1230 = vmatprep.subr.bf16.mxu1 %v1402_v0 }
 0x173   :  { %1231 = vmatpush3.bf16.msra.mxu1 %v1302_v32 }
 0x176   :  { %1233 = vmatmul.mubr.bf16.vlgmr.msra.gmra.mrb[24].mxu1 %v754_v35 }
 0x177   :  { %1236 = vmatprep.mubr.msk.bf16.mxu1 %vm1403_vm0, %v1402_v0 }
 0x17e   :  { %1237 = vmatmul.mubr.bf16.gmra.mrb[28].mxu1 %v755_v38 }
 0x17f   :  { %1240 = vmatprep.mubr.msk.bf16.mxu1 %vm1403_vm0, %v1402_v0 }
 0x186   :  { %1241 = vmatmul.mubr.bf16.gmra.mrb[32].mxu1 %v756_v40 }
 0x229   :  { %v623_v41 = vpop.f32.mrb[12].mxu1 }
 0x22a   :  { %v1178_v42 = vpop.f32.mrb[13].mxu1 }
 0x22b   :  { %v626_v43 = vpop.f32.mrb[14].mxu1 }
 0x22c   :  { %v1179_v44 = vpop.f32.mrb[15].mxu1 }
 0x231   :  { %v727_v45 = vpop.f32.mrb[24].mxu0 }
 0x232   :  { %v728_v46 = vadd.f32 %v727_v45, %v623_v41  ;;  %v1206_v47 = vpop.f32.mrb[25].mxu0 }
 0x233   :  { %v730_v48 = vpop.f32.mrb[26].mxu0 }
 0x234   :  { %v731_v49 = vadd.f32 %v730_v48, %v626_v43  ;;  %v1207_v50 = vpop.f32.mrb[27].mxu0 }
 0x237   :  { %v631_v51 = vpop.f32.mrb[16].mxu1 }
 0x238   :  { %v1182_v52 = vpop.f32.mrb[17].mxu1 }
 0x239   :  { %v735_v53 = vpop.f32.mrb[28].mxu0  ;;  %v634_v54 = vpop.f32.mrb[18].mxu1 }
 0x23a   :  { %v736_v55 = vadd.f32 %v735_v53, %v631_v51  ;;  %v1210_v56 = vpop.f32.mrb[29].mxu0  ;;  %v1183_v0 = vpop.f32.mrb[19].mxu1 }
 0x23b   :  { %v738_v57 = vpop.f32.mrb[30].mxu0 }
 0x23c   :  { %v739_v58 = vadd.f32 %v738_v57, %v634_v54  ;;  %v1211_v59 = vpop.f32.mrb[31].mxu0 }
 0x23f   :  { %v639_v60 = vpop.f32.mrb[20].mxu1 }
 0x240   :  { %v1186_v61 = vpop.f32.mrb[21].mxu1 }
 0x241   :  { %v743_v62 = vpop.f32.mrb[32].mxu0  ;;  %v642_v63 = vpop.f32.mrb[22].mxu1 }
 0x242   :  { %v744_v1 = vadd.f32 %v743_v62, %v639_v60  ;;  %v1214_v2 = vpop.f32.mrb[33].mxu0  ;;  %v1187_v3 = vpop.f32.mrb[23].mxu1 }
 0x243   :  { %v746_v4 = vpop.f32.mrb[34].mxu0 }
 0x244   :  { %v1215_v5 = vpop.f32.mrb[35].mxu0 }
 0x249   :  { %v856_v6 = vpop.f32.mrb[24].mxu1 }
 0x24a   :  { %v878_v8 = vadd.f32 %v856_v6, %v728_v46  ;;  %v1234_v9 = vpop.f32.mrb[25].mxu1 }
 0x24b   :  { %v859_v10 = vpop.f32.mrb[26].mxu1 }
 0x24c   :  { %v888_v14 = vadd.f32 %v993_v7, %v878_v8  ;;  %v879_v15 = vadd.f32 %v859_v10, %v731_v49  ;;  %v1235_v19 = vpop.f32.mrb[27].mxu1 }
 0x24e   :  { %v897_v20 = vadd.f32 %v996_v12, %v888_v14  ;;  %v889_v21 = vadd.f32 %v993_v7, %v879_v15 }
 0x250   :  { %v899_v22 = vmax.f32 %v897_v20, 0.0  ;;  %v898_v23 = vadd.f32 %v997_v13, %v889_v21 }
 0x251   :  { %v864_v24 = vpop.f32.mrb[28].mxu1 }
 0x252   :  { %901 = vst [vmem:[#allocation10] sm:$0xff] %v899_v22  ;;  %v900_v27 = vmax.f32 %v898_v23, 0.0  ;;  %v880_v28 = vadd.f32 %v864_v24, %v736_v55  ;;  %v1238_v29 = vpop.f32.mrb[29].mxu1 }
 0x253   :  { %v867_v30 = vpop.f32.mrb[30].mxu1 }
 0x254   :  { %902 = vst [vmem:[#allocation10 + $0x8] sm:$0xff] %v900_v27  ;;  %v890_v12 = vadd.f32 %v993_v7, %v880_v28  ;;  %v881_v31 = vadd.f32 %v867_v30, %v739_v58  ;;  %v1239_v32 = vpop.f32.mrb[31].mxu1 }
 0x256   :  { %v916_v11 = vadd.f32 %v910_v25, %v890_v12  ;;  %v891_v13 = vadd.f32 %v993_v7, %v881_v31 }
 0x258   :  { %v919_v34 = vmax.f32 %v916_v11, 0.0  ;;  %v917_v35 = vadd.f32 %v912_v33, %v891_v13 }
 0x259   :  { %v872_v36 = vpop.f32.mrb[32].mxu1 }
 0x25a   :  { %923 = vst [vmem:[#allocation10 + $0xe] sm:$0xfc] %v919_v34  ;;  %v920_v17 = vmax.f32 %v917_v35, 0.0  ;;  %v882_v16 = vadd.f32 %v872_v36, %v744_v1  ;;  %v1242_v18 = vpop.f32.mrb[33].mxu1 }
 0x25b   :  { %v875_v37 = vpop.f32.mrb[34].mxu1 }
 0x25c   :  { %924 = vst [vmem:[#allocation10 + $0x16] sm:$0xff] %v920_v17  ;;  %v892_v38 = vadd.f32 %v993_v7, %v882_v16  ;;  %v1243_v39 = vpop.f32.mrb[35].mxu1 }
 0x25e   :  { %v918_v40 = vadd.f32 %v911_v26, %v892_v38 }
 0x260   :  { %v921_v41 = vmax.f32 %v918_v40, 0.0 }
 0x262   :  { %925 = vst [vmem:[#allocation10 + $0x1e] sm:$0x3] %v921_v41 }
 0x263   :  { %1380 = shalt.err (!%p1377_p0)
}
 0x264   :  { %s1381_s6 = scalar_lea.hbm %s1622_s4, 512 }
 0x265   :  { %p1382_p1 = scmp.ne.s32.totalorder %s1622_s4, %s1381_s6  ;;  %p1385_p2 = scmp.lt.u32.totalorder %s1381_s6, %s1622_s4 }
 0x267   :  { %p1387_p3 = pnand %p1385_p2, %p1382_p1 }
 0x269   :  { %1390 = shalt.err (!%p1387_p3)
}
 0x26a   :  { %s1405_s11 = smov 128   ;;  %s1406_s12 = smov 8  }
 0x26b   :  { %937 = dma.vmem_to_hbm [thread:$0]  %s932_s28, 512, %s1622_s4, [#allocation6], %s1405_s11, %s1405_s11, %s1406_s12  }
 0x26c   :  { %1395 = dma.done.wait [#allocation6], 512  }
 0x26d   :  { %1396 = vsyncadd [#allocation6], 4294966784 }
 0x26e   :  { %941 = vsyncpa [#allocation5], 1 }
 0x26f   :  { %942 = vsyncpa [#allocation8], 1 }
 0x270   :  { %943 = vsyncpa [#allocation6], 1 }

</bundles_post_ra>
